<compile_context>
chip_gen: v6e
topology: v6e:2x2x1
jax: 0.10.0
libtpu: 0.0.40
codegen_flags: <defaults>
</compile_context>

<pallas_src>
import functools

import jax
import jax.numpy as jnp
from jax.experimental import pallas as pl
from jax.experimental.pallas import tpu as pltpu


def _pos_embed_kernel(x_ref, y_ref, out_ref, *, h, w, num_pos_feats):
    """x_ref: (w, C) = col_embed(arange(w)); y_ref: (h, C) = row_embed(arange(h)).

    out_ref: (h, w, 2C) channel-last positional embedding, single block.
    """
    C = num_pos_feats
    x_emb = x_ref[...]                                           # (w, C)
    y_emb = y_ref[...]                                           # (h, C)
    # Pure broadcasts (leading-dim and sublane): lane axis is the channel
    # axis, so stores are wide and unmasked for C a multiple of 64.
    out_ref[:, :, :C] = jnp.broadcast_to(x_emb[None, :, :], (h, w, C))
    out_ref[:, :, C:] = jnp.broadcast_to(y_emb[:, None, :], (h, w, C))


def position_embedding_learned(mask, col_weight, row_weight):
    """mask: [bs, h, w] (values unused). Weights: [num_embed, C] each.

    Returns pos: [bs, 2*C, h, w] float32 (matches the PyTorch module).
    """
    bs, h, w = mask.shape
    col_num_embed, C = col_weight.shape
    row_num_embed, C2 = row_weight.shape
    assert C == C2
    assert w <= col_num_embed and h <= row_num_embed

    # Embedding lookup with arange indices == a leading static slice; done in
    # the wrapper so the kernel only DMAs the rows it actually uses.
    x_emb = col_weight[:w]                                       # (w, C)
    y_emb = row_weight[:h]                                       # (h, C)

    kernel = functools.partial(_pos_embed_kernel, h=h, w=w, num_pos_feats=C)

    # Single kernel invocation: the block is batch-independent, so compute it
    # exactly once.  Full arrays mapped straight into VMEM (no grid).
    pos_hwc = pl.pallas_call(
        kernel,
        out_shape=jax.ShapeDtypeStruct((h, w, 2 * C), jnp.float32),
        in_specs=[
            pl.BlockSpec(memory_space=pltpu.MemorySpace.VMEM),
            pl.BlockSpec(memory_space=pltpu.MemorySpace.VMEM),
        ],
        out_specs=pl.BlockSpec(memory_space=pltpu.MemorySpace.VMEM),
    )(x_emb, y_emb)

    # One-time layout permute to NCHW + batch broadcast, handled by XLA where
    # it can fuse with the consumer (instead of being re-done per grid step).
    pos = jnp.transpose(pos_hwc, (2, 0, 1))                      # (2C, h, w)
    return jnp.broadcast_to(pos[None], (bs, 2 * C, h, w))


def reference(mask, col_weight, row_weight):
    bs, h, w = mask.shape
    x_emb = col_weight[:w]                                       # (w, C)
    y_emb = row_weight[:h]                                       # (h, C)
    top = jnp.broadcast_to(x_emb[None, :, :], (h, w, x_emb.shape[-1]))
    bot = jnp.broadcast_to(y_emb[:, None, :], (h, w, y_emb.shape[-1]))
    pos = jnp.concatenate([top, bot], axis=-1)                   # (h, w, 2C)
    pos = jnp.transpose(pos, (2, 0, 1))                          # (2C, h, w)
    return jnp.broadcast_to(pos[None], (bs,) + pos.shape)


if __name__ == "__main__":
    # Small, module-consistent shapes (module default num_pos_feats=256;
    # use 128 here so 2C = 256 lanes -> lane-dense stores, still small).
    num_pos_feats = 128
    row_num_embed = 50
    col_num_embed = 50
    bs, h, w = 2, 16, 16

    key = jax.random.PRNGKey(0)
    k_row, k_col, k_mask = jax.random.split(key, 3)

    # nn.init.uniform_ -> U[0, 1)
    row_weight = jax.random.uniform(k_row, (row_num_embed, num_pos_feats),
                                    dtype=jnp.float32)
    col_weight = jax.random.uniform(k_col, (col_num_embed, num_pos_feats),
                                    dtype=jnp.float32)

    # ByteTensor mask; values are irrelevant to the output.
    mask = (jax.random.uniform(k_mask, (bs, h, w)) > 0.5).astype(jnp.uint8)

    fn = jax.jit(position_embedding_learned)
    pos = jax.block_until_ready(fn(mask, col_weight, row_weight))

    ref = reference(mask, col_weight, row_weight)
    assert pos.shape == (bs, 2 * num_pos_feats, h, w), pos.shape
    assert jnp.allclose(pos, ref, atol=0.0, rtol=0.0), "mismatch vs reference"

    print("KERNEL_OK")
</pallas_src>

<mosaic_0001>
module attributes {stable_mosaic.version = 11 : i64} {
  func.func @_pos_embed_kernel(%arg0: memref<16x128xf32, #tpu.memory_space<vmem>>, %arg1: memref<16x128xf32, #tpu.memory_space<vmem>>, %arg2: memref<16x16x256xf32, #tpu.memory_space<vmem>>) attributes {dimension_semantics = [], scalar_prefetch = 0 : i64, scratch_operands = 0 : i64, tpu.core_type = #tpu.core_type<tc>} {
    %c0 = arith.constant 0 : index
    %c0_0 = arith.constant 0 : index
    %0 = vector.load %arg0[%c0, %c0_0] : memref<16x128xf32, #tpu.memory_space<vmem>>, vector<16x128xf32>
    %c0_1 = arith.constant 0 : index
    %c0_2 = arith.constant 0 : index
    %1 = vector.load %arg1[%c0_1, %c0_2] : memref<16x128xf32, #tpu.memory_space<vmem>>, vector<16x128xf32>
    %2 = vector.shape_cast %0 : vector<16x128xf32> to vector<1x16x128xf32>
    %3 = vector.shape_cast %2 : vector<1x16x128xf32> to vector<1x16x128xf32>
    %4 = vector.broadcast %3 : vector<1x16x128xf32> to vector<16x16x128xf32>
    %c0_3 = arith.constant 0 : index
    %c0_4 = arith.constant 0 : index
    %c0_5 = arith.constant 0 : index
    %5 = vector.load %arg2[%c0_3, %c0_4, %c0_5] : memref<16x16x256xf32, #tpu.memory_space<vmem>>, vector<16x16x128xf32>
    tpu.vector_store %arg2[%c0_3, %c0_4, %c0_5], %4 {strides = array<i32>} : memref<16x16x256xf32, #tpu.memory_space<vmem>>, vector<16x16x128xf32>,
    %6 = vector.shape_cast %1 : vector<16x128xf32> to vector<16x1x128xf32>
    %7 = vector.shape_cast %6 : vector<16x1x128xf32> to vector<16x1x128xf32>
    %8 = vector.broadcast %7 : vector<16x1x128xf32> to vector<16x16x128xf32>
    %c0_6 = arith.constant 0 : index
    %c0_7 = arith.constant 0 : index
    %c128 = arith.constant 128 : index
    %9 = vector.load %arg2[%c0_6, %c0_7, %c128] : memref<16x16x256xf32, #tpu.memory_space<vmem>>, vector<16x16x128xf32>
    tpu.vector_store %arg2[%c0_6, %c0_7, %c128], %8 {strides = array<i32>} : memref<16x16x256xf32, #tpu.memory_space<vmem>>, vector<16x16x128xf32>,
    return
  }
}

</mosaic_0001>

<bundles_post_ra>
// kernel: position_embedding_learned.1
= control target key start
LH: loop header
LB: loop body
LE: loop exit
PB: predicated region body
PF: predicated region fallthrough
CT: control target
= control target key end

     0   :  { %v53_v0 = vlaneseq  ;;  %v266_v4 = vmov 1966171168   ;;  %s504_s0 = inlined_call_operand.vmem [shape: f32[16,128], index: 0, kind: input, shape index: {}]   ;;  %s505_s2 = inlined_call_operand.vmem [shape: f32[16,16,256], index: 2, kind: output, shape index: {}]   ;;  %s506_s1 = inlined_call_operand.vmem [shape: f32[16,128], index: 1, kind: input, shape index: {}]  }
   0x1   :  { %v11_v1 = vld [vmem:[%s504_s0] sm:$0xff]  ;;  %v12_v2 = vld [vmem:[%s504_s0 + $0x8] sm:$0xff]  ;;  %v51_v5 = vunpack.c.l.s4 %v266_v4 }
   0x2   :  { %v13_v3 = vld [vmem:[%s506_s1] sm:$0xff]  ;;  %15 = vst [vmem:[%s505_s2] sm:$0xff] %v11_v1  ;;  %17 = vst [vmem:[%s505_s2 + $0x20] sm:$0xff] %v11_v1  ;;  %v54_v6 = vshrl.u32 %v53_v0, 7  ;;  %v14_v7 = vld [vmem:[%s506_s1 + $0x8] sm:$0xff] }
   0x3   :  { %19 = vst [vmem:[%s505_s2 + $0x40] sm:$0xff] %v11_v1  ;;  %21 = vst [vmem:[%s505_s2 + $0x60] sm:$0xff] %v11_v1  ;;  %v52_v8 = vunpack.c.0.s8 %v51_v5  ;;  %v49_v9 = vcombine.high %v13_v3, %v13_v3  ;;  %v98_v10 = vcombine.high %v14_v7, %v14_v7 }
   0x4   :  { %23 = vst [vmem:[%s505_s2 + $0x80] sm:$0xff] %v11_v1  ;;  %25 = vst [vmem:[%s505_s2 + $0xa0] sm:$0xff] %v11_v1  ;;  %v390_v12 = vsub.s32 0, %v54_v6 }
   0x5   :  { %27 = vst [vmem:[%s505_s2 + $0xc0] sm:$0xff] %v11_v1  ;;  %29 = vst [vmem:[%s505_s2 + $0xe0] sm:$0xff] %v11_v1  ;;  %v55_v11 = vsub.s32 %v52_v8, %v54_v6 }
   0x6   :  { %31 = vst [vmem:[%s505_s2 + $0x100] sm:$0xff] %v11_v1  ;;  %33 = vst [vmem:[%s505_s2 + $0x120] sm:$0xff] %v11_v1 }
   0x7   :  { %35 = vst [vmem:[%s505_s2 + $0x140] sm:$0xff] %v11_v1  ;;  %37 = vst [vmem:[%s505_s2 + $0x160] sm:$0xff] %v11_v1  ;;  %v56_v13 = vrot.slane %v13_v3, %v55_v11  ;;  %v63_v14 = vrot.slane %v49_v9, %v55_v11  ;;  %v105_v15 = vrot.slane %v14_v7, %v55_v11 }
   0x8   :  { %39 = vst [vmem:[%s505_s2 + $0x180] sm:$0xff] %v11_v1  ;;  %41 = vst [vmem:[%s505_s2 + $0x1a0] sm:$0xff] %v11_v1  ;;  %v112_v16 = vrot.slane %v98_v10, %v55_v11 }
   0x9   :  { %43 = vst [vmem:[%s505_s2 + $0x1c0] sm:$0xff] %v11_v1  ;;  %45 = vst [vmem:[%s505_s2 + $0x1e0] sm:$0xff] %v11_v1  ;;  %v72_v17 = vrot.slane %v56_v13, %v55_v11  ;;  %v64_v18 = vcombine.high %v56_v13, %v56_v13  ;;  %v79_v19 = vrot.slane %v63_v14, %v55_v11 }
   0xa   :  { %16 = vst [vmem:[%s505_s2 + $0x10] sm:$0xff] %v12_v2  ;;  %18 = vst [vmem:[%s505_s2 + $0x30] sm:$0xff] %v12_v2  ;;  %v65_v20 = vcombine.high %v63_v14, %v63_v14  ;;  %v121_v21 = vrot.slane %v105_v15, %v55_v11  ;;  %v113_v22 = vcombine.high %v105_v15, %v105_v15 }
   0xb   :  { %20 = vst [vmem:[%s505_s2 + $0x50] sm:$0xff] %v12_v2  ;;  %22 = vst [vmem:[%s505_s2 + $0x70] sm:$0xff] %v12_v2  ;;  %v128_v23 = vrot.slane %v112_v16, %v55_v11  ;;  %v114_v24 = vcombine.high %v112_v16, %v112_v16  ;;  %v150_v25 = vrot.slane %v72_v17, %v390_v12 }
   0xc   :  { %24 = vst [vmem:[%s505_s2 + $0x90] sm:$0xff] %v12_v2  ;;  %26 = vst [vmem:[%s505_s2 + $0xb0] sm:$0xff] %v12_v2  ;;  %v86_v26 = vrot.slane %v64_v18, %v55_v11  ;;  %v94_v27 = vcombine.high %v72_v17, %v72_v17  ;;  %v166_v28 = vrot.slane %v79_v19, %v390_v12 }
   0xd   :  { %28 = vst [vmem:[%s505_s2 + $0xd0] sm:$0xff] %v12_v2  ;;  %30 = vst [vmem:[%s505_s2 + $0xf0] sm:$0xff] %v12_v2  ;;  %v93_v29 = vrot.slane %v65_v20, %v55_v11  ;;  %v95_v30 = vcombine.high %v79_v19, %v79_v19  ;;  %v182_v31 = vrot.slane %v121_v21, %v390_v12 }
   0xe   :  { %32 = vst [vmem:[%s505_s2 + $0x110] sm:$0xff] %v12_v2  ;;  %34 = vst [vmem:[%s505_s2 + $0x130] sm:$0xff] %v12_v2  ;;  %v135_v32 = vrot.slane %v113_v22, %v55_v11  ;;  %v154_v33 = vrot.slane %v86_v26, %v390_v12  ;;  %v158_v34 = vrot.slane %v94_v27, %v390_v12 }
   0xf   :  { %36 = vst [vmem:[%s505_s2 + $0x150] sm:$0xff] %v12_v2  ;;  %38 = vst [vmem:[%s505_s2 + $0x170] sm:$0xff] %v12_v2  ;;  %v96_v35 = vcombine.high %v86_v26, %v86_v26  ;;  %v143_v36 = vcombine.high %v121_v21, %v121_v21  ;;  %v170_v37 = vrot.slane %v93_v29, %v390_v12 }
  0x10   :  { %40 = vst [vmem:[%s505_s2 + $0x190] sm:$0xff] %v12_v2  ;;  %42 = vst [vmem:[%s505_s2 + $0x1b0] sm:$0xff] %v12_v2  ;;  %v174_v38 = vrot.slane %v95_v30, %v390_v12  ;;  %v97_v39 = vcombine.high %v93_v29, %v93_v29  ;;  %v186_v40 = vrot.slane %v135_v32, %v390_v12 }
  0x11   :  { %44 = vst [vmem:[%s505_s2 + $0x1d0] sm:$0xff] %v12_v2  ;;  %46 = vst [vmem:[%s505_s2 + $0x1f0] sm:$0xff] %v12_v2  ;;  %v162_v41 = vrot.slane %v96_v35, %v390_v12  ;;  %v190_v42 = vrot.slane %v143_v36, %v390_v12  ;;  %v145_v43 = vcombine.high %v135_v32, %v135_v32 }
  0x12   :  { %227 = vst [vmem:[%s505_s2 + $0x8] sm:$0xff] %v150_v25  ;;  %228 = vst [vmem:[%s505_s2 + $0x18] sm:$0xff] %v150_v25  ;;  %v198_v44 = vrot.slane %v128_v23, %v390_v12  ;;  %v178_v45 = vrot.slane %v97_v39, %v390_v12  ;;  %v142_v46 = vrot.slane %v114_v24, %v55_v11 }
  0x13   :  { %235 = vst [vmem:[%s505_s2 + $0x88] sm:$0xff] %v166_v28  ;;  %236 = vst [vmem:[%s505_s2 + $0x98] sm:$0xff] %v166_v28  ;;  %v144_v47 = vcombine.high %v128_v23, %v128_v23  ;;  %v194_v48 = vrot.slane %v145_v43, %v390_v12 }
  0x14   :  { %243 = vst [vmem:[%s505_s2 + $0x108] sm:$0xff] %v182_v31  ;;  %244 = vst [vmem:[%s505_s2 + $0x118] sm:$0xff] %v182_v31  ;;  %v202_v49 = vrot.slane %v142_v46, %v390_v12  ;;  %v146_v51 = vcombine.high %v142_v46, %v142_v46 }
  0x15   :  { %229 = vst [vmem:[%s505_s2 + $0x28] sm:$0xff] %v154_v33  ;;  %230 = vst [vmem:[%s505_s2 + $0x38] sm:$0xff] %v154_v33  ;;  %v206_v50 = vrot.slane %v144_v47, %v390_v12 }
  0x16   :  { %231 = vst [vmem:[%s505_s2 + $0x48] sm:$0xff] %v158_v34  ;;  %232 = vst [vmem:[%s505_s2 + $0x58] sm:$0xff] %v158_v34  ;;  %v210_v52 = vrot.slane %v146_v51, %v390_v12 }
  0x17   :  { %237 = vst [vmem:[%s505_s2 + $0xa8] sm:$0xff] %v170_v37  ;;  %238 = vst [vmem:[%s505_s2 + $0xb8] sm:$0xff] %v170_v37 }
  0x18   :  { %239 = vst [vmem:[%s505_s2 + $0xc8] sm:$0xff] %v174_v38  ;;  %240 = vst [vmem:[%s505_s2 + $0xd8] sm:$0xff] %v174_v38 }
  0x19   :  { %245 = vst [vmem:[%s505_s2 + $0x128] sm:$0xff] %v186_v40  ;;  %246 = vst [vmem:[%s505_s2 + $0x138] sm:$0xff] %v186_v40 }
  0x1a   :  { %233 = vst [vmem:[%s505_s2 + $0x68] sm:$0xff] %v162_v41  ;;  %234 = vst [vmem:[%s505_s2 + $0x78] sm:$0xff] %v162_v41 }
  0x1b   :  { %247 = vst [vmem:[%s505_s2 + $0x148] sm:$0xff] %v190_v42  ;;  %248 = vst [vmem:[%s505_s2 + $0x158] sm:$0xff] %v190_v42 }
  0x1c   :  { %251 = vst [vmem:[%s505_s2 + $0x188] sm:$0xff] %v198_v44  ;;  %252 = vst [vmem:[%s505_s2 + $0x198] sm:$0xff] %v198_v44 }
  0x1d   :  { %241 = vst [vmem:[%s505_s2 + $0xe8] sm:$0xff] %v178_v45  ;;  %242 = vst [vmem:[%s505_s2 + $0xf8] sm:$0xff] %v178_v45 }
  0x1e   :  { %249 = vst [vmem:[%s505_s2 + $0x168] sm:$0xff] %v194_v48  ;;  %250 = vst [vmem:[%s505_s2 + $0x178] sm:$0xff] %v194_v48 }
  0x1f   :  { %253 = vst [vmem:[%s505_s2 + $0x1a8] sm:$0xff] %v202_v49  ;;  %254 = vst [vmem:[%s505_s2 + $0x1b8] sm:$0xff] %v202_v49 }
  0x20   :  { %255 = vst [vmem:[%s505_s2 + $0x1c8] sm:$0xff] %v206_v50  ;;  %256 = vst [vmem:[%s505_s2 + $0x1d8] sm:$0xff] %v206_v50 }
  0x21   :  { %257 = vst [vmem:[%s505_s2 + $0x1e8] sm:$0xff] %v210_v52  ;;  %258 = vst [vmem:[%s505_s2 + $0x1f8] sm:$0xff] %v210_v52 }

</bundles_post_ra>
